<compile_context>
chip_gen: v5e
topology: v5e:2x2
jax: 0.10.0
libtpu: 0.0.40
codegen_flags: <defaults>
</compile_context>

<pallas_src>
import jax
import jax.numpy as jnp
from jax.experimental import pallas as pl
from jax.experimental.pallas import tpu as pltpu


def linear_tanh_kernel(x_ref, w_ref, b_ref, o_ref):
    x = x_ref[...]            # (TB, F)  rows of x, native layout
    w = w_ref[...]            # (1, F)   lane-dense weight row (broadcasts over rows)
    b = b_ref[0, 0]           # scalar bias from SMEM
    # Degenerate (N=1) matvec on the VPU: elementwise multiply + lane reduce.
    # TODO(synk): for very large F, chunk the F axis with an unrolled fori_loop
    # accumulator so the live product stays within the vreg file.
    s = jnp.sum(x * w, axis=1, keepdims=True)          # (TB, 1), f32
    o_ref[...] = jnp.tanh(s + b).astype(o_ref.dtype)


def _round_up(v, m):
    return ((v + m - 1) // m) * m


def linear_tanh(x, w, b):
    """x: (B, F) f32, w: (1, F) f32 (nn.Linear weight), b: (1, 1) f32 -> (B, 1)."""
    B, F = x.shape
    dtype = x.dtype

    # Pad only to the sublane layout boundary (8 rows), never to the tile size.
    b_pad = _round_up(B, 8)
    x_p = x if b_pad == B else jnp.pad(x, ((0, b_pad - B), (0, 0)))

    # Tile the batch by bytes: ~4 MiB per (tb, F) f32 input block. Double
    # buffered that is ~8 MiB, well under scoped VMEM on every generation
    # (v7x: 64 MiB physical / 32 MiB scoped default).
    target_block_bytes = 4 * 1024 * 1024
    tb = max(8, (target_block_bytes // (F * 4)) // 8 * 8)
    # If the batch is big enough for >= 2 tiles, cap the tile at ~half the
    # batch so the "parallel" grid axis actually splits across v7x's 2 TCs.
    if b_pad >= 16:
        tb = min(tb, _round_up(pl.cdiv(b_pad, 2), 8))
    tb = min(tb, b_pad)
    grid = pl.cdiv(b_pad, tb)

    # Explicit VMEM budget: 2x double-buffered input tile + w + output + slack.
    vmem_limit = min(
        32 * 1024 * 1024,
        max(4 * 1024 * 1024, 2 * tb * F * 4 + 2 * tb * 4 + F * 4 + (1 << 20)),
    )

    out = pl.pallas_call(
        linear_tanh_kernel,
        out_shape=jax.ShapeDtypeStruct((b_pad, 1), dtype),
        grid=(grid,),
        in_specs=[
            pl.BlockSpec((tb, F), lambda i: (i, 0)),              # x row tile
            pl.BlockSpec((1, F), lambda i: (0, 0)),               # weight (resident, lane-dense)
            pl.BlockSpec(memory_space=pltpu.MemorySpace.SMEM),    # bias scalar
        ],
        out_specs=pl.BlockSpec((tb, 1), lambda i: (i, 0)),
        compiler_params=pltpu.CompilerParams(
            dimension_semantics=("parallel",),
            vmem_limit_bytes=vmem_limit,
        ),
    )(x_p, w, b)

    # Only slice if we actually padded (keeps the small case dispatch-free).
    return out if b_pad == B else out[:B]


if __name__ == "__main__":
    key = jax.random.PRNGKey(0)
    kx, kw, kb = jax.random.split(key, 3)

    B, F = 8, 32  # batch=8, n_input_features=32

    x = jax.random.normal(kx, (B, F), dtype=jnp.float32)
    # Deterministic parameter init (mimics nn.Linear's uniform(-1/sqrt(F), 1/sqrt(F)) scale).
    bound = 1.0 / (F ** 0.5)
    w = jax.random.uniform(kw, (1, F), minval=-bound, maxval=bound, dtype=jnp.float32)
    b = jax.random.uniform(kb, (1, 1), minval=-bound, maxval=bound, dtype=jnp.float32)

    y = linear_tanh(x, w, b)
    jax.block_until_ready(y)

    # Correctness check against plain-JAX reference: tanh(x @ W^T + b).
    y_ref = jnp.tanh(x @ w.T + b)
    assert y.shape == (B, 1)
    assert jnp.allclose(y, y_ref, atol=1e-5, rtol=1e-5)

    print("KERNEL_OK")
</pallas_src>

<mosaic_0001>
module attributes {stable_mosaic.version = 11 : i64} {
  func.func @linear_tanh_kernel(%arg0: i32, %arg1: memref<8x32xf32, #tpu.memory_space<vmem>>, %arg2: memref<1x32xf32, #tpu.memory_space<vmem>>, %arg3: memref<1x1xf32, #tpu.memory_space<smem>>, %arg4: memref<8x1xf32, #tpu.memory_space<vmem>>) attributes {dimension_semantics = [#tpu.dimension_semantics<parallel>], iteration_bounds = array<i64: 1>, scalar_prefetch = 0 : i64, scratch_operands = 0 : i64, tpu.core_type = #tpu.core_type<tc>, window_params = [{transform_indices = @transform_0, window_bounds = array<i64: 8, 32>}, {pipeline_mode = #tpu.pipeline_mode<synchronous>, transform_indices = @transform_1, window_bounds = array<i64: 1, 32>}, {transform_indices = @transform_2, window_bounds = array<i64: 1, 1>}, {transform_indices = @transform_3, window_bounds = array<i64: 8, 1>}]} {
    %c0 = arith.constant 0 : index
    %c0_0 = arith.constant 0 : index
    %0 = vector.load %arg1[%c0, %c0_0] : memref<8x32xf32, #tpu.memory_space<vmem>>, vector<8x32xf32>
    %c0_1 = arith.constant 0 : index
    %c0_2 = arith.constant 0 : index
    %1 = vector.load %arg2[%c0_1, %c0_2] : memref<1x32xf32, #tpu.memory_space<vmem>>, vector<1x32xf32>
    %c0_3 = arith.constant 0 : index
    %c0_4 = arith.constant 0 : index
    %2 = memref.load %arg3[%c0_3, %c0_4] : memref<1x1xf32, #tpu.memory_space<smem>>
    %3 = vector.broadcast %1 : vector<1x32xf32> to vector<8x32xf32>
    %4 = arith.mulf %0, %3 : vector<8x32xf32>
    %cst = arith.constant dense<0.000000e+00> : vector<8xf32>
    %5 = vector.multi_reduction <add>, %4, %cst [1] : vector<8x32xf32> to vector<8xf32>
    %6 = vector.shape_cast %5 : vector<8xf32> to vector<8x1xf32>
    %7 = vector.broadcast %2 : f32 to vector<8x1xf32>
    %8 = arith.addf %6, %7 : vector<8x1xf32>
    %9 = math.tanh %8 : vector<8x1xf32>
    %c0_5 = arith.constant 0 : index
    %c0_6 = arith.constant 0 : index
    %10 = vector.load %arg4[%c0_5, %c0_6] : memref<8x1xf32, #tpu.memory_space<vmem>>, vector<8x1xf32>
    tpu.vector_store %arg4[%c0_5, %c0_6], %9 {strides = array<i32>} : memref<8x1xf32, #tpu.memory_space<vmem>>, vector<8x1xf32>,
    return
  }
  func.func @transform_0(%arg0: i32) -> (i32, i32) {
    %c0_i32 = arith.constant 0 : i32
    %c0_i32_0 = arith.constant 0 : i32
    return %arg0, %c0_i32 : i32, i32
  }
  func.func @transform_1(%arg0: i32) -> (i32, i32) {
    %c0_i32 = arith.constant 0 : i32
    %c0_i32_0 = arith.constant 0 : i32
    %c0_i32_1 = arith.constant 0 : i32
    return %c0_i32, %c0_i32_0 : i32, i32
  }
  func.func @transform_2(%arg0: i32) -> (i32, i32) {
    %c0_i32 = arith.constant 0 : i32
    %c0_i32_0 = arith.constant 0 : i32
    %c0_i32_1 = arith.constant 0 : i32
    return %c0_i32, %c0_i32_0 : i32, i32
  }
  func.func @transform_3(%arg0: i32) -> (i32, i32) {
    %c0_i32 = arith.constant 0 : i32
    %c0_i32_0 = arith.constant 0 : i32
    return %arg0, %c0_i32 : i32, i32
  }
}

</mosaic_0001>

<bundles_post_ra>
// kernel: tpu_custom_call.1
= control target key start
LH: loop header
LB: loop body
LE: loop exit
PB: predicated region body
PF: predicated region fallthrough
CT: control target
= control target key end

     0   :  { %9 = vsyncpa [#allocation4], 0  ;;  %s80_s15 = smov [#allocation3]   ;;  %s113_s0 = inlined_call_operand.hbm [shape: f32[8,32], index: 0, kind: input, shape index: {}]   ;;  %s114_s1 = inlined_call_operand.vmem [shape: f32[1,32], index: 1, kind: input, shape index: {}]   ;;  %s115_s2 = inlined_call_operand.<no memory space> [shape: f32[1,1], index: 2, kind: input, shape index: {}]   ;;  %s116_s3 = inlined_call_operand.vmem [shape: f32[8,1], index: 3, kind: output, shape index: {}]  }
   0x1   :  { %s15_s14 = sshll.u32 %s113_s0, 4  ;;  %s17_s16 = sshll.u32 %s80_s15, 4  ;;  %s16_s14 = int_to_ptr.hbm [resolvable:$true] %s15_s14  ;;  %s18_s16 = int_to_ptr.vmem [resolvable:$true] %s17_s16 }
   0x2   :  { %20 = dma.hbm_to_vmem [thread:$0]  %s16_s14, 128, %s18_s16, [#allocation4]  }
   0x3   :  { %78 = dma.done.wait [#allocation4], 128  }
   0x4   :  { %79 = vsyncadd [#allocation4], 4294967168  ;;  %v29_v0 = vld [vmem:[#allocation3] sm:$0xff]  ;;  %vm36_vm0 = vcmask 261120   ;;  %v40_v4 = vstv %s115_s2  ;;  %vm43_vm1 = vcmask 7168  }
   0x5   :  { %v51_v1 = vld [vmem:[%s114_s1] ss:$0 sm:$0xff] }
   0x6   :  { %v35_v2 = vmul.f32 %v51_v1, %v29_v0 }
   0x8   :  { %v37_v3 = vsel %vm36_vm0, %v35_v2, 0.0 }
   0x9   :  { %38 = vadd.xlane.f32.xlu0 %v37_v3 }
  0x7c   :  { %v39_v5 = vpop.xlane.xlu0 %38 }
  0x7d   :  { %v41_v6 = vadd.f32 %v40_v4, %v39_v5 }
  0x7f   :  { %52 = vtanh.f32 %v41_v6 }
  0x85   :  { %v53_v7 = vpop.eup %52 }
  0x86   :  { %44 = vst.msk [vmem:[%s116_s3] sm:$0xff] %vm43_vm1, %v53_v7 }
  0x87   :  { %49 = vsyncpa [#allocation4], 1 }

</bundles_post_ra>
